<compile_context>
chip_gen: v5e
topology: v5e:2x2
jax: 0.10.0
libtpu: 0.0.40
codegen_flags: <defaults>
</compile_context>

<pallas_src>
import functools

import numpy as np
import jax
import jax.numpy as jnp
from jax.experimental import pallas as pl
from jax.experimental.pallas import tpu as pltpu

LANE = 128  # TPU lane width; q/k/v weight segments and the output are padded to this.


def head_kernel(x_ref, wqkv_ref, bias_ref, o_ref):
    """Single-head causal self-attention, one program (no grid) at toy shapes.

    x_ref:    (B*T, C)      f32  (cast to bf16 in-kernel for the MXU)
    wqkv_ref: (C, 3*LANE)   bf16 fused [q|k|v] projection; each segment padded to a
                            128-lane tile; C**-0.5 already folded into the q segment.
    bias_ref: (B*T, B*T)    f32  additive block-diagonal causal mask (0 / -1e30)
    o_ref:    (B*T, LANE)   f32  lane-dense output (columns >= H are zero padding)
    """
    x = x_ref[...].astype(jnp.bfloat16)                       # (BT, C)

    # Fused QKV projection on the MXU, f32 accumulation, then one bf16 cast.
    qkv = jnp.dot(x, wqkv_ref[...],
                  preferred_element_type=jnp.float32)         # (BT, 3*LANE) f32
    qkv16 = qkv.astype(jnp.bfloat16)

    # Lane-tile-aligned slices (offsets 0 / 128 / 256) -> free, no lane shuffles.
    q = qkv16[:, 0 * LANE:1 * LANE]                           # scale pre-folded
    k = qkv16[:, 1 * LANE:2 * LANE]
    v = qkv16[:, 2 * LANE:3 * LANE]

    # Scores: contract the last dims (q @ k^T) with no explicit transpose (no XLU).
    # Padded columns of q and k are zero, so they contribute nothing.
    wei = jax.lax.dot_general(
        q, k,
        dimension_numbers=(((1,), (1,)), ((), ())),
        preferred_element_type=jnp.float32)                   # (BT, BT) f32

    # Precomputed block-diagonal causal mask as an additive bias (built at init).
    wei = wei + bias_ref[...]

    # Numerically stable softmax, all f32 elementwise; reciprocal on the EUP slot.
    m = jnp.max(wei, axis=-1, keepdims=True)
    e = jnp.exp(wei - m)
    denom = jnp.sum(e, axis=-1, keepdims=True)
    p = e * pl.reciprocal(denom, approx=True)

    # TODO(synk): training-mode dropout on `p` would go here; eval mode = identity.

    out = jnp.dot(p.astype(jnp.bfloat16), v,
                  preferred_element_type=jnp.float32)         # (BT, LANE) f32
    o_ref[...] = out.astype(o_ref.dtype)                      # full-width unmasked store


def prepare_head_params(wq, wk, wv):
    """ONE-TIME parameter prep (call at init, not per forward).

    Folds the module's C**-0.5 scale into the query projection (in f32, before the
    bf16 cast), pads each q/k/v segment to a 128-lane tile so in-kernel slices are
    tile-aligned, fuses them into one (C, 3*128) matrix and casts to bf16.
    """
    C, H = wq.shape
    assert H <= LANE, "single head wider than a lane tile is not supported here"
    scale = jnp.float32(C) ** -0.5          # module scales by EMBEDDING_DIM**-0.5

    def pad(w):
        return jnp.pad(w, ((0, 0), (0, LANE - H)))

    wqkv = jnp.concatenate([pad(wq * scale), pad(wk), pad(wv)], axis=1)
    return wqkv.astype(jnp.bfloat16)        # (C, 3*LANE)


def make_causal_bias(B, T):
    """ONE-TIME additive mask: block-diagonal causal over the flattened (B*T) axis.

    bias[i, j] = 0 if (i // T == j // T) and (j <= i) else -1e30.
    Built with numpy at init (B, T are static), so no iota/div/compare in-kernel.
    """
    idx = np.arange(B * T)
    row, col = idx[:, None], idx[None, :]
    allow = (col <= row) & ((row // T) == (col // T))
    return jnp.asarray(np.where(allow, 0.0, -1e30).astype(np.float32))


def head_forward(x, wqkv, bias, *, H):
    """x: (B, T, C) f32; wqkv: prepared (C, 3*LANE) bf16; bias: (B*T, B*T) f32."""
    B, T, C = x.shape
    x_flat = x.reshape(B * T, C)

    out_flat = pl.pallas_call(
        head_kernel,
        out_shape=jax.ShapeDtypeStruct((B * T, LANE), jnp.float32),
        in_specs=[
            pl.BlockSpec(memory_space=pltpu.MemorySpace.VMEM),
            pl.BlockSpec(memory_space=pltpu.MemorySpace.VMEM),
            pl.BlockSpec(memory_space=pltpu.MemorySpace.VMEM),
        ],
        out_specs=pl.BlockSpec(memory_space=pltpu.MemorySpace.VMEM),
    )(x_flat, wqkv, bias)

    # Strip lane padding: the real head width is H.
    return out_flat[:, :H].reshape(B, T, H)


def head_reference(x, wq, wk, wv):
    """Pure-JAX f32 reference for correctness checking."""
    B, T, C = x.shape
    q = x @ wq
    k = x @ wk
    v = x @ wv
    wei = (q @ jnp.swapaxes(k, -2, -1)) * (C ** -0.5)
    mask = jnp.tril(jnp.ones((T, T), dtype=bool))
    wei = jnp.where(mask, wei, -jnp.inf)
    wei = jax.nn.softmax(wei, axis=-1)
    return wei @ v


if __name__ == "__main__":
    # Hyperparameters implied by the module (small, synthetic; checkpoint hardcoded).
    CONTEXT_LEN = 8      # T
    EMBEDDING_DIM = 32   # C
    HEAD_SIZE = 16       # H
    B = 2

    key = jax.random.PRNGKey(0)
    kx, kq, kk, kv = jax.random.split(key, 4)

    x = jax.random.normal(kx, (B, CONTEXT_LEN, EMBEDDING_DIM), dtype=jnp.float32)

    # nn.Linear-style uniform init in +/- 1/sqrt(fan_in), stored as (C, H)
    # (already transposed for x @ W).
    bound = 1.0 / (EMBEDDING_DIM ** 0.5)
    wq = jax.random.uniform(kq, (EMBEDDING_DIM, HEAD_SIZE), jnp.float32, -bound, bound)
    wk = jax.random.uniform(kk, (EMBEDDING_DIM, HEAD_SIZE), jnp.float32, -bound, bound)
    wv = jax.random.uniform(kv, (EMBEDDING_DIM, HEAD_SIZE), jnp.float32, -bound, bound)

    # One-time prep, hoisted out of the per-call path.
    wqkv = jax.block_until_ready(prepare_head_params(wq, wk, wv))
    bias = jax.block_until_ready(make_causal_bias(B, CONTEXT_LEN))

    fwd = jax.jit(functools.partial(head_forward, H=HEAD_SIZE))
    out = jax.block_until_ready(fwd(x, wqkv, bias))
    ref = head_reference(x, wq, wk, wv)

    assert out.shape == (B, CONTEXT_LEN, HEAD_SIZE)
    # bf16 MXU operands (f32 accumulation) + approx reciprocal -> relaxed tolerance.
    assert jnp.allclose(out, ref, atol=3e-2, rtol=3e-2), "mismatch vs reference"

    print("KERNEL_OK")
</pallas_src>

<mosaic_0001>
module attributes {stable_mosaic.version = 11 : i64} {
  func.func @head_kernel(%arg0: memref<16x32xf32, #tpu.memory_space<vmem>>, %arg1: memref<32x384xbf16, #tpu.memory_space<vmem>>, %arg2: memref<16x16xf32, #tpu.memory_space<vmem>>, %arg3: memref<16x128xf32, #tpu.memory_space<vmem>>) attributes {dimension_semantics = [], scalar_prefetch = 0 : i64, scratch_operands = 0 : i64, tpu.core_type = #tpu.core_type<tc>} {
    %c0 = arith.constant 0 : index
    %c0_0 = arith.constant 0 : index
    %0 = vector.load %arg0[%c0, %c0_0] : memref<16x32xf32, #tpu.memory_space<vmem>>, vector<16x32xf32>
    %1 = arith.truncf %0 : vector<16x32xf32> to vector<16x32xbf16>
    %c0_1 = arith.constant 0 : index
    %c0_2 = arith.constant 0 : index
    %2 = vector.load %arg1[%c0_1, %c0_2] : memref<32x384xbf16, #tpu.memory_space<vmem>>, vector<32x384xbf16>
    %cst = arith.constant dense<0.000000e+00> : vector<16x384xf32>
    %3 = tpu.matmul %1, %2, %cst {dimension_numbers = #tpu.dot_dimension_numbers<[1], [0], [0], [1], [0, 0, 1, 1], [], []>} : vector<16x32xbf16>, vector<32x384xbf16>, vector<16x384xf32> -> vector<16x384xf32>
    %4 = arith.truncf %3 : vector<16x384xf32> to vector<16x384xbf16>
    %5 = vector.extract_strided_slice %4 {offsets = [0, 0], sizes = [16, 128], strides = [1, 1]} : vector<16x384xbf16> to vector<16x128xbf16>
    %6 = vector.extract_strided_slice %4 {offsets = [0, 128], sizes = [16, 128], strides = [1, 1]} : vector<16x384xbf16> to vector<16x128xbf16>
    %7 = vector.extract_strided_slice %4 {offsets = [0, 256], sizes = [16, 128], strides = [1, 1]} : vector<16x384xbf16> to vector<16x128xbf16>
    %cst_3 = arith.constant dense<0.000000e+00> : vector<16x16xf32>
    %8 = tpu.matmul %5, %6, %cst_3 {dimension_numbers = #tpu.dot_dimension_numbers<[1], [1], [0], [0], [0, 0, 1, 0], [], []>} : vector<16x128xbf16>, vector<16x128xbf16>, vector<16x16xf32> -> vector<16x16xf32>
    %c0_4 = arith.constant 0 : index
    %c0_5 = arith.constant 0 : index
    %9 = vector.load %arg2[%c0_4, %c0_5] : memref<16x16xf32, #tpu.memory_space<vmem>>, vector<16x16xf32>
    %10 = arith.addf %8, %9 : vector<16x16xf32>
    %cst_6 = arith.constant dense<0xFF800000> : vector<16xf32>
    %11 = vector.multi_reduction <maximumf>, %10, %cst_6 [1] : vector<16x16xf32> to vector<16xf32>
    %12 = vector.shape_cast %11 : vector<16xf32> to vector<16x1xf32>
    %13 = vector.broadcast %12 : vector<16x1xf32> to vector<16x16xf32>
    %14 = arith.subf %10, %13 : vector<16x16xf32>
    %15 = math.exp %14 : vector<16x16xf32>
    %cst_7 = arith.constant dense<0.000000e+00> : vector<16xf32>
    %16 = vector.multi_reduction <add>, %15, %cst_7 [1] : vector<16x16xf32> to vector<16xf32>
    %17 = vector.shape_cast %16 : vector<16xf32> to vector<16x1xf32>
    %18 = tpu.reciprocal %17 {approx = true} : vector<16x1xf32> -> vector<16x1xf32>
    %19 = vector.broadcast %18 : vector<16x1xf32> to vector<16x16xf32>
    %20 = arith.mulf %15, %19 : vector<16x16xf32>
    %21 = arith.truncf %20 : vector<16x16xf32> to vector<16x16xbf16>
    %cst_8 = arith.constant dense<0.000000e+00> : vector<16x128xf32>
    %22 = tpu.matmul %21, %7, %cst_8 {dimension_numbers = #tpu.dot_dimension_numbers<[1], [0], [0], [1], [0, 0, 1, 1], [], []>} : vector<16x16xbf16>, vector<16x128xbf16>, vector<16x128xf32> -> vector<16x128xf32>
    %c0_9 = arith.constant 0 : index
    %c0_10 = arith.constant 0 : index
    %23 = vector.load %arg3[%c0_9, %c0_10] : memref<16x128xf32, #tpu.memory_space<vmem>>, vector<16x128xf32>
    tpu.vector_store %arg3[%c0_9, %c0_10], %22 {strides = array<i32>} : memref<16x128xf32, #tpu.memory_space<vmem>>, vector<16x128xf32>,
    return
  }
}

</mosaic_0001>

<bundles_post_ra>
// kernel: head_forward.1
= control target key start
LH: loop header
LB: loop body
LE: loop exit
PB: predicated region body
PF: predicated region fallthrough
CT: control target
= control target key end

     0   :  { %8 = vsyncpa [#allocation3], 0  ;;  %s411_s0 = inlined_call_operand.hbm [shape: f32[16,32], index: 0, kind: input, shape index: {}]   ;;  %s412_s1 = inlined_call_operand.hbm [shape: bf16[32,384], index: 1, kind: input, shape index: {}]   ;;  %s413_s2 = inlined_call_operand.hbm [shape: f32[16,16], index: 2, kind: input, shape index: {}]   ;;  %s414_s3 = inlined_call_operand.vmem [shape: f32[16,128], index: 3, kind: output, shape index: {}]  }
   0x1   :  { %9 = vsyncpa [#allocation5], 0  ;;  %s27_s14 = sshll.u32 %s412_s1, 4  ;;  %s361_s15 = smov [#allocation4]   ;;  %s28_s14 = int_to_ptr.hbm [resolvable:$true] %s27_s14 }
   0x2   :  { %s29_s16 = sshll.u32 %s361_s15, 4  ;;  %s14_s19 = sshll.u32 %s411_s0, 4  ;;  %s30_s16 = int_to_ptr.vmem [resolvable:$true] %s29_s16  ;;  %s15_s19 = int_to_ptr.hbm [resolvable:$true] %s14_s19 }
   0x3   :  { %s362_s20 = smov 192   ;;  %s363_s21 = smov 12  }
   0x4   :  { %35 = dma.hbm_to_vmem [thread:$0]  %s28_s14, 768, %s30_s16, [#allocation5], %s362_s20, %s362_s20, %s363_s21  }
   0x5   :  { %s364_s22 = smov [#allocation2]   ;;  %s365_s24 = smov 128  }
   0x6   :  { %s16_s23 = sshll.u32 %s364_s22, 4  ;;  %s366_s25 = smov 8   ;;  %s17_s23 = int_to_ptr.vmem [resolvable:$true] %s16_s23 }
   0x7   :  { %22 = dma.hbm_to_vmem [thread:$0]  %s15_s19, 256, %s17_s23, [#allocation3], %s365_s24, %s365_s24, %s366_s25  }
   0x8   :  { %s40_s27 = sshll.u32 %s413_s2, 4  ;;  %s367_s28 = smov [#allocation6]   ;;  %s41_s27 = int_to_ptr.hbm [resolvable:$true] %s40_s27 }
   0x9   :  { %s42_s29 = sshll.u32 %s367_s28, 4  ;;  %s43_s29 = int_to_ptr.vmem [resolvable:$true] %s42_s29 }
   0xa   :  { %48 = dma.hbm_to_vmem [thread:$0]  %s41_s27, 256, %s43_s29, [#allocation5], %s365_s24, %s365_s24, %s366_s25  }
   0xb   :  { %357 = dma.done.wait [#allocation3], 256  }
   0xc   :  { %358 = vsyncadd [#allocation3], 4294967040 }
   0xd   :  { %359 = dma.done.wait [#allocation5], 1024  }
   0xe   :  { %360 = vsyncadd [#allocation5], 4294966272  ;;  %v250_v0 = vld [vmem:[#allocation4 + $0x18] sm:$0xf]  ;;  %v268_v1 = vld [vmem:[#allocation4 + $0x20] sm:$0xf0] }
   0xf   :  { %v267_v2 = vld [vmem:[#allocation4 + $0x1c] sm:$0xf]  ;;  %v251_v3 = vor.u32 %v268_v1, %v250_v0  ;;  %v252_v4 = vld [vmem:[#allocation4 + $0x24] sm:$0xf0]  ;;  %v238_v5 = vld [vmem:[#allocation4] sm:$0xf] }
  0x10   :  { %v265_v6 = vld [vmem:[#allocation4 + $0x8] sm:$0xf0]  ;;  %v255_v7 = vor.u32 %v267_v2, %v252_v4  ;;  %v264_v8 = vld [vmem:[#allocation4 + $0x4] sm:$0xf]  ;;  %v240_v9 = vld [vmem:[#allocation4 + $0xc] sm:$0xf0] }
  0x11   :  { %115 = vmatpush.bf16.msra.mxu0 %v251_v3  ;;  %v239_v10 = vor.u32 %v265_v6, %v238_v5  ;;  %v62_v11 = vld [vmem:[#allocation2] sm:$0xff]  ;;  %v63_v12 = vld [vmem:[#allocation2 + $0x8] sm:$0xff]  ;;  %v243_v13 = vor.u32 %v264_v8, %v240_v9  ;;  %vm105_vm0 = vcmask 261120   ;;  %v258_v27 = vld [vmem:[#allocation4 + $0x20] sm:$0xf]  ;;  %vm181_vm1 = vcmask 130048  }
  0x12   :  { %129 = vmatpush.bf16.msra.mxu1 %v255_v7  ;;  %v64_v14 = vpack.c.bf16 %v63_v12, %v62_v11  ;;  %v269_v28 = vld [vmem:[#allocation4 + $0x28] sm:$0xf0]  ;;  %v246_v29 = vld [vmem:[#allocation4 + $0x8] sm:$0xf]  ;;  %v266_v31 = vld [vmem:[#allocation4 + $0x10] sm:$0xf0] }
  0x13   :  { %v259_v30 = vor.u32 %v269_v28, %v258_v27  ;;  %v247_v32 = vor.u32 %v266_v31, %v246_v29  ;;  %v155_v33 = vld [vmem:[#allocation6] sm:$0xff]  ;;  %v156_v37 = vld [vmem:[#allocation6 + $0x8] sm:$0xff] }
  0x15   :  { %116 = vmatpush.bf16.msra.mxu0 %v239_v10  ;;  %143 = vmatpush.bf16.msra.mxu2 %v259_v30 }
  0x16   :  { %130 = vmatpush.bf16.msra.mxu1 %v243_v13 }
  0x18   :  { %260 = vmatmul.msk.bf16.vlgmr.msra.gmra.mxu0 %vm105_vm0, %v64_v14 }
  0x19   :  { %261 = vmatmul.msk.bf16.vlgmr.msra.gmra.mxu1 %vm105_vm0, %v64_v14  ;;  %144 = vmatpush.bf16.msra.mxu2 %v247_v32 }
  0x1c   :  { %262 = vmatmul.msk.bf16.vlgmr.msra.gmra.mxu2 %vm105_vm0, %v64_v14 }
  0x95   :  { %v118_v15 = vpop.f32.mrf.mxu0 }
  0x96   :  { %v132_v16 = vpop.f32.mrf.mxu1 }
  0x97   :  { %v151_v17 = vpack.c.bf16 %v132_v16, %v118_v15 }
  0x99   :  { %v163_v21 = vunpack.c.h.b16 %v151_v17  ;;  %v159_v25 = vunpack.c.l.b16 %v151_v17 }
  0x9d   :  { %v120_v18 = vpop.f32.mrf.mxu0 }
  0x9e   :  { %v134_v19 = vpop.f32.mrf.mxu1 }
  0x9f   :  { %v153_v20 = vpack.c.bf16 %v134_v19, %v120_v18  ;;  %v146_v43 = vpop.f32.mrf.mxu2 }
  0xa0   :  { %v152_v45 = vpack.c.bf16 %v146_v43, %v146_v43 }
  0xa1   :  { %v164_v22 = vunpack.c.h.b16 %v153_v20  ;;  %v160_v24 = vunpack.c.l.b16 %v153_v20 }
  0xa2   :  { %v207_v51 = vunpack.c.l.b16 %v152_v45 }
  0xa3   :  { %v165_v23 = vpack.c.b16 %v164_v22, %v163_v21  ;;  %v161_v26 = vpack.c.b16 %v160_v24, %v159_v25 }
  0xa5   :  { %174 = vmatpush.bf16.xpose.msra.mxu3 %v165_v23 }
  0xa7   :  { %v148_v48 = vpop.f32.mrf.mxu2 }
  0xa8   :  { %v154_v52 = vpack.c.bf16 %v148_v48, %v148_v48 }
  0xaa   :  { %v208_v54 = vunpack.c.l.b16 %v154_v52 }
  0xac   :  { %175 = vmatmul.bf16.vlgmr.msra.gmra.mxu3 %v161_v26  ;;  %v209_v55 = vpack.c.b16 %v208_v54, %v207_v51 }
  0xae   :  { %221 = vmatpush.bf16.msrb.mxu0 %v209_v55 }
 0x12f   :  { %v176_v34 = vpop.f32.mrf.mxu3 }
 0x130   :  { %v177_v35 = vadd.f32 %v176_v34, %v155_v33 }
 0x132   :  { %v182_v36 = vsel %vm181_vm1, %v177_v35, -inf }
 0x133   :  { %183 = vmax.xlane.f32.xlu0 %v182_v36 }
 0x137   :  { %v178_v38 = vpop.f32.mrf.mxu3 }
 0x138   :  { %v179_v39 = vadd.f32 %v178_v38, %v156_v37 }
 0x13a   :  { %v185_v40 = vsel %vm181_vm1, %v179_v39, -inf }
 0x13b   :  { %186 = vmax.xlane.f32.xlu0 %v185_v40 }
 0x1a6   :  { %v184_v41 = vpop.xlane.xlu0 %183 }
 0x1a7   :  { %v188_v42 = vsub.f32 %v177_v35, %v184_v41 }
 0x1a9   :  { %v190_v44 = vmul.f32 1.442695, %v188_v42 }
 0x1ab   :  { %277 = vpow2.f32 %v190_v44 }
 0x1ae   :  { %v187_v46 = vpop.xlane.xlu0 %186 }
 0x1af   :  { %v189_v47 = vsub.f32 %v179_v39, %v187_v46 }
 0x1b1   :  { %v278_v49 = vpop.eup %277  ;;  %v192_v50 = vmul.f32 1.442695, %v189_v47 }
 0x1b2   :  { %v194_v53 = vsel %vm181_vm1, %v278_v49, 0.0 }
 0x1b3   :  { %279 = vpow2.f32 %v192_v50  ;;  %195 = vadd.xlane.f32.xlu1 %v194_v53 }
 0x1b9   :  { %v280_v56 = vpop.eup %279 }
 0x1ba   :  { %v197_v57 = vsel %vm181_vm1, %v280_v56, 0.0 }
 0x1bb   :  { %198 = vadd.xlane.f32.xlu1 %v197_v57 }
 0x226   :  { %v196_v58 = vpop.xlane.xlu1 %195 }
 0x227   :  { %281 = vrcp.f32 %v196_v58 }
 0x22d   :  { %v282_v60 = vpop.eup %281 }
 0x22e   :  { %v199_v59 = vpop.xlane.xlu1 %198  ;;  %v202_v62 = vmul.f32 %v282_v60, %v278_v49 }
 0x22f   :  { %283 = vrcp.f32 %v199_v59 }
 0x235   :  { %v284_v61 = vpop.eup %283 }
 0x236   :  { %v203_v63 = vmul.f32 %v284_v61, %v280_v56 }
 0x238   :  { %v204_v0 = vpack.c.bf16 %v203_v63, %v202_v62 }
 0x23a   :  { %263 = vmatmul.msk.bf16.vlgmr.msrb.gmra.mxu0 %vm181_vm1, %v204_v0 }
 0x2b7   :  { %v223_v1 = vpop.f32.mrf.mxu0 }
 0x2b8   :  { %228 = vst [vmem:[%s414_s3] sm:$0xff] %v223_v1 }
 0x2bf   :  { %v225_v2 = vpop.f32.mrf.mxu0 }
 0x2c0   :  { %229 = vst [vmem:[%s414_s3 + $0x8] sm:$0xff] %v225_v2 }
 0x2c1   :  { %234 = vsyncpa [#allocation3], 1 }
 0x2c2   :  { %235 = vsyncpa [#allocation5], 1 }

</bundles_post_ra>
